<compile_context>
chip_gen: v7x
topology: tpu7x:2x2x1
jax: 0.10.0
libtpu: 0.0.40
codegen_flags: <defaults>
</compile_context>

<pallas_src>
import jax
import jax.numpy as jnp
from jax import lax
from jax.experimental import pallas as pl
from jax.experimental.pallas import tpu as pltpu

# ---- config (mirrors the PyTorch `config` dict, small synthetic sizes) ----
BLOCK_SIZE = 8                   # block_size (max sequence length)
N_EMBD = 32                      # n_embd
N_HEAD = 4                       # n_head
HEAD_SIZE = N_EMBD // N_HEAD     # 8
DROPOUT = 0.0                    # inference: identity

# MXU operand dtype: bf16 operands + f32 accumulation run the MXU at full rate
# on v5e/v6e/v7x and halve the vreg footprint of q/k/v/p. Elementwise /
# softmax math stays f32 regardless. Set to jnp.float32 for bit-tight checks.
MATMUL_DTYPE = jnp.bfloat16

# Large finite negative instead of -inf: identical softmax result here (the
# diagonal is always unmasked) but cannot produce NaN if a row were ever
# fully masked (e.g. padding tokens).
NEG_INF = -1e30


def attention_head_kernel(x_ref, wq_ref, wk_ref, wv_ref, o_ref):
    """One grid step == one batch element.

    x_ref:  (T, C)  VMEM   (batch dim squeezed away by the BlockSpec)
    w*_ref: (C, H)  VMEM   nn.Linear.weight.T for query / key / value
    o_ref:  (T, H)  VMEM
    """
    T = x_ref.shape[0]
    h = o_ref.shape[-1]

    x = x_ref[...].astype(MATMUL_DTYPE)

    # Three separate lane-0-aligned projections (a fused (C, 3H) matmul would
    # require non-vreg-aligned lane slices at offsets 8/16 for H=8).
    q = jnp.dot(x, wq_ref[...].astype(MATMUL_DTYPE),
                preferred_element_type=jnp.float32)               # (T, H) f32
    k = jnp.dot(x, wk_ref[...].astype(MATMUL_DTYPE),
                preferred_element_type=jnp.float32)               # (T, H) f32
    v = jnp.dot(x, wv_ref[...].astype(MATMUL_DTYPE),
                preferred_element_type=jnp.float32)               # (T, H) f32

    # Fold 1/sqrt(H) into q (T*H elements) instead of the (T, T) score matrix.
    q = q * (h ** -0.5)

    # scores = q @ k^T, contracting on the head dim of both operands.
    # TODO(synk): at real tile sizes confirm via pl.lower_as_mlir that Mosaic
    # does not insert a per-kv-tile vxpose for the RHS contraction; if it
    # does, emit k pre-transposed (H, tk) once per kv tile.
    scores = lax.dot_general(
        q.astype(MATMUL_DTYPE), k.astype(MATMUL_DTYPE),
        dimension_numbers=(((1,), (1,)), ((), ())),
        preferred_element_type=jnp.float32)                       # (T, T) f32

    # Causal mask built in-kernel from iotas — no precomputed bias DMA.
    row = lax.broadcasted_iota(jnp.int32, (T, T), 0)
    col = lax.broadcasted_iota(jnp.int32, (T, T), 1)
    scores = jnp.where(row >= col, scores, NEG_INF)

    # Row softmax, entirely in f32. Exact reciprocal (EUP cost negligible;
    # attention rows sum to 1 for training-parity reuse).
    m = jnp.max(scores, axis=-1, keepdims=True)
    e = jnp.exp(scores - m)
    p = e / jnp.sum(e, axis=-1, keepdims=True)

    # TODO(synk): training-mode dropout on the attention weights is not
    # implemented (identity at inference, dropout=0.0).

    o_ref[...] = jnp.dot(p.astype(MATMUL_DTYPE), v.astype(MATMUL_DTYPE),
                         preferred_element_type=jnp.float32).astype(o_ref.dtype)


def attention_head(x, w_key, w_query, w_value):
    """x: (B, T, C) float32; weights: (C, HEAD_SIZE) == nn.Linear.weight.T."""
    B, T, C = x.shape
    H = w_key.shape[1]

    cost = pl.CostEstimate(
        flops=B * (3 * 2 * T * C * H + 2 * 2 * T * T * H),
        transcendentals=B * T * T,
        bytes_accessed=4 * (B * T * C + 3 * C * H + B * T * H),
    )

    # Batch is the (parallel) grid axis: one batch element per step. The last
    # two dims of every block equal the full array dims, satisfying the
    # (8, 128) tiling rule at these sizes.
    # TODO(synk): at real GPT sizes (large T) switch to a flash-attention
    # style q-block x kv-block grid with online softmax; budget tiles for
    # v7x's 64 MiB VMEM (128 MiB on v5e/v6e) and set vmem_limit_bytes.
    out = pl.pallas_call(
        attention_head_kernel,
        out_shape=jax.ShapeDtypeStruct((B, T, H), x.dtype),
        grid=(B,),
        in_specs=[
            pl.BlockSpec((pl.Squeezed(), T, C), lambda b: (b, 0, 0)),
            pl.BlockSpec((C, H), lambda b: (0, 0)),
            pl.BlockSpec((C, H), lambda b: (0, 0)),
            pl.BlockSpec((C, H), lambda b: (0, 0)),
        ],
        out_specs=pl.BlockSpec((pl.Squeezed(), T, H), lambda b: (b, 0, 0)),
        compiler_params=pltpu.CompilerParams(
            dimension_semantics=("parallel",)),
        cost_estimate=cost,
    )(x, w_query, w_key, w_value)

    return out


def _reference(x, wk, wq, wv):
    """Pure-JAX f32 reference matching the PyTorch forward semantics."""
    k = x @ wk
    q = x @ wq
    v = x @ wv
    weight = (q @ jnp.swapaxes(k, -2, -1)) * (k.shape[-1] ** -0.5)
    T = x.shape[1]
    tril = jnp.tril(jnp.ones((T, T), dtype=bool))
    weight = jnp.where(tril, weight, -jnp.inf)
    weight = jax.nn.softmax(weight, axis=-1)
    return weight @ v


if __name__ == "__main__":
    key = jax.random.PRNGKey(0)
    kx, kk, kq, kv = jax.random.split(key, 4)

    B, T, C = 2, BLOCK_SIZE, N_EMBD
    x = jax.random.normal(kx, (B, T, C), dtype=jnp.float32)

    # deterministic synthetic weights, stored as (C, HEAD_SIZE) = Linear.weight.T
    w_scale = C ** -0.5
    w_key_m = jax.random.normal(kk, (C, HEAD_SIZE), dtype=jnp.float32) * w_scale
    w_query_m = jax.random.normal(kq, (C, HEAD_SIZE), dtype=jnp.float32) * w_scale
    w_value_m = jax.random.normal(kv, (C, HEAD_SIZE), dtype=jnp.float32) * w_scale

    out = attention_head(x, w_key_m, w_query_m, w_value_m)
    out = jax.block_until_ready(out)

    ref = _reference(x, w_key_m, w_query_m, w_value_m)
    assert out.shape == (B, T, HEAD_SIZE)

    # bf16 MXU operands (with f32 accumulation) quantize q/k/v/p to ~2^-9
    # relative precision, so the comparison against the pure-f32 reference
    # needs a correspondingly looser tolerance.
    if MATMUL_DTYPE == jnp.bfloat16:
        atol = rtol = 5e-2
    else:
        atol = rtol = 1e-5
    assert jnp.allclose(out, ref, atol=atol, rtol=rtol), "mismatch vs reference"

    print("KERNEL_OK")
</pallas_src>

<mosaic_0001>
module attributes {stable_mosaic.version = 11 : i64} {
  func.func @attention_head_kernel(%arg0: i32, %arg1: memref<1x8x32xf32, #tpu.memory_space<vmem>>, %arg2: memref<32x8xf32, #tpu.memory_space<vmem>>, %arg3: memref<32x8xf32, #tpu.memory_space<vmem>>, %arg4: memref<32x8xf32, #tpu.memory_space<vmem>>, %arg5: memref<1x8x8xf32, #tpu.memory_space<vmem>>) attributes {dimension_semantics = [#tpu.dimension_semantics<parallel>], iteration_bounds = array<i64: 2>, scalar_prefetch = 0 : i64, scratch_operands = 0 : i64, tpu.core_type = #tpu.core_type<tc>, window_params = [{transform_indices = @transform_0, window_bounds = array<i64: 1, 8, 32>}, {pipeline_mode = #tpu.pipeline_mode<synchronous>, transform_indices = @transform_1, window_bounds = array<i64: 32, 8>}, {pipeline_mode = #tpu.pipeline_mode<synchronous>, transform_indices = @transform_2, window_bounds = array<i64: 32, 8>}, {pipeline_mode = #tpu.pipeline_mode<synchronous>, transform_indices = @transform_3, window_bounds = array<i64: 32, 8>}, {transform_indices = @transform_4, window_bounds = array<i64: 1, 8, 8>}]} {
    %c0 = arith.constant 0 : index
    %c0_0 = arith.constant 0 : index
    %c0_1 = arith.constant 0 : index
    %0 = vector.load %arg1[%c0, %c0_0, %c0_1] : memref<1x8x32xf32, #tpu.memory_space<vmem>>, vector<1x8x32xf32>
    %1 = vector.shape_cast %0 : vector<1x8x32xf32> to vector<8x32xf32>
    %2 = arith.truncf %1 : vector<8x32xf32> to vector<8x32xbf16>
    %c0_2 = arith.constant 0 : index
    %c0_3 = arith.constant 0 : index
    %3 = vector.load %arg2[%c0_2, %c0_3] : memref<32x8xf32, #tpu.memory_space<vmem>>, vector<32x8xf32>
    %4 = arith.truncf %3 : vector<32x8xf32> to vector<32x8xbf16>
    %cst = arith.constant dense<0.000000e+00> : vector<8x8xf32>
    %5 = tpu.matmul %2, %4, %cst {dimension_numbers = #tpu.dot_dimension_numbers<[1], [0], [0], [1], [0, 0, 1, 1], [], []>} : vector<8x32xbf16>, vector<32x8xbf16>, vector<8x8xf32> -> vector<8x8xf32>
    %c0_4 = arith.constant 0 : index
    %c0_5 = arith.constant 0 : index
    %6 = vector.load %arg3[%c0_4, %c0_5] : memref<32x8xf32, #tpu.memory_space<vmem>>, vector<32x8xf32>
    %7 = arith.truncf %6 : vector<32x8xf32> to vector<32x8xbf16>
    %cst_6 = arith.constant dense<0.000000e+00> : vector<8x8xf32>
    %8 = tpu.matmul %2, %7, %cst_6 {dimension_numbers = #tpu.dot_dimension_numbers<[1], [0], [0], [1], [0, 0, 1, 1], [], []>} : vector<8x32xbf16>, vector<32x8xbf16>, vector<8x8xf32> -> vector<8x8xf32>
    %c0_7 = arith.constant 0 : index
    %c0_8 = arith.constant 0 : index
    %9 = vector.load %arg4[%c0_7, %c0_8] : memref<32x8xf32, #tpu.memory_space<vmem>>, vector<32x8xf32>
    %10 = arith.truncf %9 : vector<32x8xf32> to vector<32x8xbf16>
    %cst_9 = arith.constant dense<0.000000e+00> : vector<8x8xf32>
    %11 = tpu.matmul %2, %10, %cst_9 {dimension_numbers = #tpu.dot_dimension_numbers<[1], [0], [0], [1], [0, 0, 1, 1], [], []>} : vector<8x32xbf16>, vector<32x8xbf16>, vector<8x8xf32> -> vector<8x8xf32>
    %cst_10 = arith.constant 0.353553385 : f32
    %12 = vector.broadcast %cst_10 : f32 to vector<8x8xf32>
    %13 = arith.mulf %5, %12 : vector<8x8xf32>
    %14 = arith.truncf %13 : vector<8x8xf32> to vector<8x8xbf16>
    %15 = arith.truncf %8 : vector<8x8xf32> to vector<8x8xbf16>
    %cst_11 = arith.constant dense<0.000000e+00> : vector<8x8xf32>
    %16 = tpu.matmul %14, %15, %cst_11 {dimension_numbers = #tpu.dot_dimension_numbers<[1], [1], [0], [0], [0, 0, 1, 0], [], []>} : vector<8x8xbf16>, vector<8x8xbf16>, vector<8x8xf32> -> vector<8x8xf32>
    %17 = tpu.iota {dimensions = array<i32: 0>} : vector<8x8xi32>
    %18 = tpu.iota {dimensions = array<i32: 1>} : vector<8x8xi32>
    %19 = arith.cmpi sge, %17, %18 : vector<8x8xi32>
    %cst_12 = arith.constant -1.000000e+30 : f32
    %20 = vector.broadcast %cst_12 : f32 to vector<8x8xf32>
    %21 = arith.select %19, %16, %20 : vector<8x8xi1>, vector<8x8xf32>
    %cst_13 = arith.constant dense<0xFF800000> : vector<8xf32>
    %22 = vector.multi_reduction <maximumf>, %21, %cst_13 [1] : vector<8x8xf32> to vector<8xf32>
    %23 = vector.shape_cast %22 : vector<8xf32> to vector<8x1xf32>
    %24 = vector.broadcast %23 : vector<8x1xf32> to vector<8x8xf32>
    %25 = arith.subf %21, %24 : vector<8x8xf32>
    %26 = math.exp %25 : vector<8x8xf32>
    %cst_14 = arith.constant dense<0.000000e+00> : vector<8xf32>
    %27 = vector.multi_reduction <add>, %26, %cst_14 [1] : vector<8x8xf32> to vector<8xf32>
    %28 = vector.shape_cast %27 : vector<8xf32> to vector<8x1xf32>
    %29 = vector.broadcast %28 : vector<8x1xf32> to vector<8x8xf32>
    %30 = arith.divf %26, %29 : vector<8x8xf32>
    %31 = arith.truncf %30 : vector<8x8xf32> to vector<8x8xbf16>
    %32 = arith.truncf %11 : vector<8x8xf32> to vector<8x8xbf16>
    %cst_15 = arith.constant dense<0.000000e+00> : vector<8x8xf32>
    %33 = tpu.matmul %31, %32, %cst_15 {dimension_numbers = #tpu.dot_dimension_numbers<[1], [0], [0], [1], [0, 0, 1, 1], [], []>} : vector<8x8xbf16>, vector<8x8xbf16>, vector<8x8xf32> -> vector<8x8xf32>
    %c0_16 = arith.constant 0 : index
    %c0_17 = arith.constant 0 : index
    %c0_18 = arith.constant 0 : index
    %34 = vector.load %arg5[%c0_16, %c0_17, %c0_18] : memref<1x8x8xf32, #tpu.memory_space<vmem>>, vector<1x8x8xf32>
    %35 = vector.shape_cast %34 : vector<1x8x8xf32> to vector<8x8xf32>
    %36 = vector.shape_cast %33 : vector<8x8xf32> to vector<1x8x8xf32>
    tpu.vector_store %arg5[%c0_16, %c0_17, %c0_18], %36 {strides = array<i32>} : memref<1x8x8xf32, #tpu.memory_space<vmem>>, vector<1x8x8xf32>,
    return
  }
  func.func @transform_0(%arg0: i32) -> (i32, i32, i32) {
    %c0_i32 = arith.constant 0 : i32
    %c0_i32_0 = arith.constant 0 : i32
    %c0_i32_1 = arith.constant 0 : i32
    return %arg0, %c0_i32, %c0_i32_0 : i32, i32, i32
  }
  func.func @transform_1(%arg0: i32) -> (i32, i32) {
    %c0_i32 = arith.constant 0 : i32
    %c0_i32_0 = arith.constant 0 : i32
    %c0_i32_1 = arith.constant 0 : i32
    return %c0_i32, %c0_i32_0 : i32, i32
  }
  func.func @transform_2(%arg0: i32) -> (i32, i32) {
    %c0_i32 = arith.constant 0 : i32
    %c0_i32_0 = arith.constant 0 : i32
    %c0_i32_1 = arith.constant 0 : i32
    return %c0_i32, %c0_i32_0 : i32, i32
  }
  func.func @transform_3(%arg0: i32) -> (i32, i32) {
    %c0_i32 = arith.constant 0 : i32
    %c0_i32_0 = arith.constant 0 : i32
    %c0_i32_1 = arith.constant 0 : i32
    return %c0_i32, %c0_i32_0 : i32, i32
  }
  func.func @transform_4(%arg0: i32) -> (i32, i32, i32) {
    %c0_i32 = arith.constant 0 : i32
    %c0_i32_0 = arith.constant 0 : i32
    %c0_i32_1 = arith.constant 0 : i32
    return %arg0, %c0_i32, %c0_i32_0 : i32, i32, i32
  }
}

</mosaic_0001>

<bundles_post_ra>
// kernel: tpu_custom_call.1
= control target key start
LH: loop header
LB: loop body
LE: loop exit
PB: predicated region body
PF: predicated region fallthrough
CT: control target
= control target key end

     0   :  { %9 = vsyncpa [#allocation3], 0  ;;  %s879_s0 = inlined_call_operand.vmem [shape: f32[2,8,32], index: 0, kind: input, shape index: {}]   ;;  %s880_s1 = inlined_call_operand.vmem [shape: f32[32,8], index: 1, kind: input, shape index: {}]   ;;  %s881_s2 = inlined_call_operand.vmem [shape: f32[32,8], index: 2, kind: input, shape index: {}]   ;;  %s882_s3 = inlined_call_operand.vmem [shape: f32[32,8], index: 3, kind: input, shape index: {}]   ;;  %s883_s4 = inlined_call_operand.hbm [shape: f32[2,8,8], index: 4, kind: output, shape index: {}]  }
   0x1   :  { %11 = vsyncpa [#allocation3 + $0x1], 0  ;;  %s729_s15 = smov 0   ;;  %s731_s16 = smov 0  }
   0x2   :  { %s733_s17 = smov 0   ;;  %s735_s18 = smov 0  }
   0x3 LB: > { %s750_s19 = sadd.s32 4294967295, %s699_s18   ;;  %s528_s20 = sadd.s32 4294967294, %s699_s18   ;;  %s699_s18 = sphi %s735_s18, %s889_s18   ;;  %s695_s17 = sphi %s733_s17, %s888_s17   ;;  %s691_s16 = sphi %s731_s16, %s887_s16   ;;  %s687_s15 = sphi %s729_s15, %s886_s15  }
   0x4   : > { %s754_s21 = sadd.s32 1, %s699_s18   ;;  %s113_s22 = sadd.s32 1, %s695_s17 }
   0x5   : > { %s110_s23 = ssub.s32 %s699_s18, %s754_s21  ;;  %p123_p0 = scmp.ne.s32.totalorder %s695_s17, %s691_s16 }
   0x6   : > { %p111_p1 = scmp.eq.s32.totalorder %s110_s23, 0  ;;  %p124_p2 = scmp.eq.s32.totalorder %s750_s19, 1 }
   0x7   : > { %p129_p3 = scmp.ne.s32.totalorder %s691_s16, %s687_s15  ;;  %p130_p4 = scmp.eq.s32.totalorder %s528_s20, 1 }
   0x8   : > { %s765_s24 = scalar_select %p111_p1, %s695_s17, %s113_s22  }
   0x9   : > { %p767_p5 = por %p124_p2, %p123_p0  ;;  %p771_p6 = por %p130_p4, %p129_p3 }
   0xa   : > { %p531_p7 = scmp.ge.s32.totalorder %s699_s18, 1  ;;  %p164_p8 = scmp.lt.s32.totalorder %s699_s18, 3 }
   0xc   : > { %p165_p9 = pnand %p531_p7, %p164_p8 }
   0xd   : > { %v246_v0 = vld [vmem:[%s881_s2] sm:$0xff] (!%p165_p9)  ;;  %v247_v1 = vld [vmem:[%s881_s2 + $0x8] sm:$0xff] (!%p165_p9)  ;;  %p189_p10 = scmp.lt.s32.totalorder (!%p165_p9), %s750_s19, 1  ;;  %v701_v3 = vmov (!%p165_p9), 0.0   ;;  %v248_v6 = vld [vmem:[%s881_s2 + $0x10] sm:$0xff] (!%p165_p9)  ;;  %vm702_vm0 = vmmov (!%p165_p9), 0   ;;  %v388_v33 = vlaneseq (!%p165_p9) }
   0xe   : > { %168 = sbr.rel (%p165_p9) target bundleno = 1006 (0x3ee), region = 36  ;;  %v196_v2 = vld [vmem:[%s880_s1] sm:$0xff] (!%p165_p9)  ;;  %564 = vmatprep.subr.bf16.mxu1 (!%p165_p9), %v701_v3  ;;  %v250_v4 = vpack.c.bf16 (!%p165_p9), %v247_v1, %v246_v0  ;;  %556 = vmatprep.subr.bf16.mxu0 (!%p165_p9), %v701_v3  ;;  %v197_v5 = vld [vmem:[%s880_s1 + $0x8] sm:$0xff] (!%p165_p9)  ;;  %v249_v7 = vld [vmem:[%s881_s2 + $0x18] sm:$0xff] (!%p165_p9)  ;;  %vm202_vm1 = vcmask (!%p165_p9), 261120   ;;  %vm341_vm2 = vcmask (!%p165_p9), 64512  }
   0xf   : > { %v200_v8 = vpack.c.bf16 (!%p165_p9), %v197_v5, %v196_v2  ;;  %568 = vmatprep.mubr.msk.bf16.mxu1 (!%p165_p9), %vm702_vm0, %v701_v3  ;;  %v198_v9 = vld [vmem:[%s880_s1 + $0x10] sm:$0xff] (!%p165_p9)  ;;  %v199_v10 = vld [vmem:[%s880_s1 + $0x18] sm:$0xff] (!%p165_p9)  ;;  %560 = vmatprep.mubr.msk.bf16.mxu0 (!%p165_p9), %vm702_vm0, %v701_v3  ;;  %v251_v11 = vpack.c.bf16 (!%p165_p9), %v249_v7, %v248_v6  ;;  %v292_v27 = vld [vmem:[%s882_s3] sm:$0xff] (!%p165_p9)  ;;  %v389_v34 = vshrl.u32 (!%p165_p9), %v388_v33, 7  ;;  %v391_v35 = vand.u32 (!%p165_p9), 127, %v388_v33  ;;  %s540_s20 = sshll.u32 (!%p165_p9), %s750_s19, 7 }
  0x10   : > { %565 = vmatpush3.bf16.msra.mxu1 (!%p165_p9), %v250_v4  ;;  %v201_v12 = vpack.c.bf16 (!%p165_p9), %v199_v10, %v198_v9  ;;  %v293_v28 = vld [vmem:[%s882_s3 + $0x8] sm:$0xff] (!%p165_p9)  ;;  %v294_v29 = vld [vmem:[%s882_s3 + $0x10] sm:$0xff] (!%p165_p9)  ;;  %v295_v31 = vld [vmem:[%s882_s3 + $0x18] sm:$0xff] (!%p165_p9)  ;;  %vm410_vm4 = vcmask (!%p165_p9), 1043456   ;;  %s836_s29 = scalar_lea.hbm (!%p165_p9), %s883_s4, %s540_s20 }
  0x11   : > { %566 = vmatprep.subr.bf16.mxu1 (!%p165_p9), %v701_v3  ;;  %557 = vmatpush3.bf16.msra.mxu0 (!%p165_p9), %v200_v8  ;;  %v296_v30 = vpack.c.bf16 (!%p165_p9), %v293_v28, %v292_v27  ;;  %v297_v32 = vpack.c.bf16 (!%p165_p9), %v295_v31, %v294_v29  ;;  %vm392_vm3 = vcmp.ge.s32.totalorder (!%p165_p9), %v389_v34, %v391_v35 }
  0x12   : > { %558 = vmatprep.subr.bf16.mxu0 (!%p165_p9), %v701_v3 }
  0x14   : > { %567 = vmatpush3.bf16.msra.mxu1 (!%p165_p9), %v251_v11 }
  0x15   : > { %s190_s13 = scalar_select %p189_p10, %s750_s19, 1  ;;  %559 = vmatpush3.bf16.msra.mxu0 %v201_v12  ;;  %580 = vmatprep.subr.bf16.mxu1 %v701_v3 }
  0x16   : > { %572 = vmatprep.subr.bf16.mxu0 %v701_v3  ;;  %s703_s19 = smov [#allocation2]  }
  0x17   : > { %s533_s27 = sshll.u32 %s190_s13, 3  ;;  %s186_s13 = sand.u32 1, %s691_s16  }
  0x18   : > { %s192_s30 = scalar_lea.vmem %s879_s0, %s533_s27  ;;  %s532_s14 = sshll.u32 %s186_s13, 3 }
  0x19   : > { %v194_v13 = vld [vmem:[%s192_s30] sm:$0xff]  ;;  %s188_s22 = scalar_lea.vmem [#allocation2], %s532_s14  ;;  %s456_s30 = scalar_lea.sflag [#allocation3], %s186_s13 }
  0x1a   : > { %v195_v14 = vpack.c.bf16 %v194_v13, %v194_v13  ;;  %s469_s23 = sshll.u32 %s188_s22, 4  ;;  %s641_s6 = sshll.u32 %s703_s19, 4  ;;  %s838_s23 = int_to_ptr.vmem [resolvable:$true] %s469_s23  ;;  %s642_s6 = int_to_ptr.vmem [resolvable:$false] %s641_s6 }
  0x1b   : > { %s637_s5 = scalar_lea.vmem %s838_s23, 128  ;;  %s643_s7 = scalar_lea.vmem %s642_s6, 256 }
  0x1c   : > { %569 = vmatmul.mubr.msk.bf16.vlgmr.msra.gmra.mrb[0].mxu1 %vm202_vm1, %v195_v14  ;;  %561 = vmatmul.mubr.msk.bf16.vlgmr.msra.gmra.mrb[0].mxu0 %vm202_vm1, %v195_v14  ;;  %p638_p11 = scmp.ne.s32.totalorder %s838_s23, %s637_s5  ;;  %p644_p0 = scmp.lt.s32.totalorder %s838_s23, %s642_s6 }
  0x1d   : > { %582 = vmatprep.mubr.msk.bf16.mxu1 %vm702_vm0, %v701_v3  ;;  %576 = vmatprep.mubr.msk.bf16.mxu0 %vm702_vm0, %v701_v3  ;;  %p645_p1 = scmp.lt.s32.totalorder %s643_s7, %s637_s5 }
  0x1e   : > { %573 = vmatpush3.bf16.msra.mxu0 %v296_v30  ;;  %p639_p12 = pnand %p638_p11, %p767_p5 }
  0x1f   : > { %574 = vmatprep.subr.bf16.mxu0 %v701_v3  ;;  %p646_p2 = por %p645_p1, %p644_p0 }
  0x20   : > { %p640_p13 = pneg %p639_p12 }
  0x22   : > { %575 = vmatpush3.bf16.msra.mxu0 %v297_v32  ;;  %p647_p3 = pnand %p646_p2, %p640_p13 }
  0x23   : > { %586 = vmatprep.subr.bf16.mxu0 %v701_v3 }
  0x25   : > { %577 = vmatmul.mubr.msk.bf16.vlgmr.msra.gmra.mrb[4].mxu0 %vm202_vm1, %v195_v14 }
  0x26   : > { %588 = vmatprep.mubr.msk.bf16.mxu0 %vm702_vm0, %v701_v3 }
  0xef   : > { %v286_v15 = vpop.f32.mrb[0].mxu1  ;;  %v240_v18 = vpop.f32.mrb[0].mxu0 }
  0xf0   : > { %v340_v16 = vpack.c.bf16 %v286_v15, %v286_v15  ;;  %v570_v17 = vpop.f32.mrb[1].mxu1  ;;  %v562_v20 = vpop.f32.mrb[1].mxu0  ;;  %v338_v23 = vmul.f32 0.35355338, %v240_v18 }
  0xf1   : > { %v289_v19 = vpop.f32.mrb[2].mxu1  ;;  %v243_v24 = vpop.f32.mrb[2].mxu0 }
  0xf2   : > { %v346_v21 = vsel %vm341_vm2, %v340_v16, 0  ;;  %v571_v22 = vpop.f32.mrb[3].mxu1  ;;  %v563_v25 = vpop.f32.mrb[3].mxu0  ;;  %v339_v26 = vpack.c.bf16 %v338_v23, %v338_v23 }
  0xf3   : > { %581 = vmatpush3.bf16.xpose.msra.mxu1 %v346_v21 }
  0xf8   : > { %v332_v47 = vpop.f32.mrb[4].mxu0 }
  0xf9   : > { %v578_v48 = vpop.f32.mrb[5].mxu0  ;;  %v406_v51 = vpack.c.bf16 %v332_v47, %v332_v47 }
  0xfa   : > { %583 = vmatmul.mubr.msk.bf16.vlgmr.msra.gmra.mrb[4].mxu1 %vm341_vm2, %v339_v26  ;;  %v335_v49 = vpop.f32.mrb[6].mxu0 }
  0xfb   : > { %v579_v50 = vpop.f32.mrb[7].mxu0  ;;  %v412_v52 = vsel %vm410_vm4, %v406_v51, 0 }
  0xfc   : > { %587 = vmatpush3.bf16.msra.mxu0 %v412_v52 }
 0x1cd   : > { %v382_v36 = vpop.f32.mrb[4].mxu1 }
 0x1ce   : > { %v393_v37 = vsel %vm392_vm3, %v382_v36, -1e+30  ;;  %v584_v38 = vpop.f32.mrb[5].mxu1 }
 0x1cf   : > { %v385_v39 = vpop.f32.mrb[6].mxu1  ;;  %v394_v40 = vsel %vm341_vm2, %v393_v37, -inf }
 0x1d0   : > { %395 = vmax.xlane.f32.xlu0 %v394_v40  ;;  %v585_v41 = vpop.f32.mrb[7].mxu1 }
 0x25d   : > { %v396_v42 = vpop.xlane.xlu0 %395 }
 0x25e   : > { %v397_v43 = vsub.f32 %v393_v37, %v396_v42 }
 0x260   : > { %v398_v44 = vmul.f32 1.442695, %v397_v43 }
 0x262   : > { %633 = vpow2.f32 %v398_v44 }
 0x26c   : > { %v634_v45 = vpop.eup %633 }
 0x26d   : > { %v400_v46 = vsel %vm341_vm2, %v634_v45, 0.0 }
 0x26e   : > { %401 = vadd.xlane.f32.xlu0 %v400_v46 }
 0x2fb   : > { %v402_v53 = vpop.xlane.xlu0 %401 }
 0x2fc   : > { %635 = vrcp.f32 %v402_v53 }
 0x306   : > { %v636_v54 = vpop.eup %635 }
 0x307   : > { %v404_v55 = vmul.f32 %v636_v54, %v634_v45 }
 0x309   : > { %v405_v56 = vpack.c.bf16 %v404_v55, %v404_v55 }
 0x30b   : > { %589 = vmatmul.mubr.msk.bf16.vlgmr.msra.gmra.mrb[8].mxu0 %vm341_vm2, %v405_v56 }
 0x3de   : > { %v448_v57 = vpop.f32.mrb[8].mxu0 }
 0x3df   : > { %454 = vst.msk [vmem:[%s188_s22] sm:$0xff] %vm341_vm2, %v448_v57  ;;  %v590_v58 = vpop.f32.mrb[9].mxu0 }
 0x3e0   : > { %v451_v59 = vpop.f32.mrb[10].mxu0 }
 0x3e1   : > { %650 = shalt.err (!%p647_p3)
}
 0x3e2   : > { %s651_s8 = scalar_lea.hbm %s836_s29, 128  ;;  %s655_s11 = scalar_lea.hbm %s883_s4, 256 }
 0x3e3   : > { %p652_p4 = scmp.ne.s32.totalorder %s836_s29, %s651_s8  ;;  %p656_p9 = scmp.lt.u32.totalorder %s836_s29, %s883_s4 }
 0x3e4   : > { %p657_p10 = scmp.lt.u32.totalorder %s655_s11, %s651_s8  ;;  %p659_p12 = scmp.lt.u32.totalorder %s651_s8, %s836_s29 }
 0x3e5   : > { %p653_p7 = pnand %p652_p4, %p767_p5 }
 0x3e6   : > { %p658_p11 = por %p657_p10, %p656_p9 }
 0x3e7   : > { %p654_p8 = pneg %p653_p7 }
 0x3e8   : > { %p660_p13 = por %p659_p12, %p658_p11 }
 0x3ea   : > { %p661_p0 = pnand %p660_p13, %p654_p8 }
 0x3ec   : > { %664 = shalt.err (!%p661_p0)
}
 0x3ed   : > { %592 = dma.vmem_to_hbm [thread:$0]  (%p767_p5), %s838_s23, 128, %s836_s29, %s456_s30   ;;  %v591_v60 = vpop.f32.mrb[11].mxu0 }
 0x3ee PF: > { %p598_p1 = scmp.ge.s32.totalorder %s699_s18, 2  ;;  %s481_s14 = sand.u32 1, %s687_s15  }
 0x3ef   : > { %s482_s20 = scalar_lea.sflag [#allocation3], %s481_s14 }
 0x3f0   : > { %p595_p2 = pnand %p598_p1, %p771_p6 }
 0x3f2   : > { %682 = dma.done.wait (!%p595_p2), %s482_s20, 128  }
 0x3f3   : > { %684 = vsyncadd (!%p595_p2), %s482_s20, 4294967168  ;;  %p14_p3 = scmp.ge.s32.totalorder %s754_s21, 4   ;;  %s886_s15 = smov %s691_s16 }
 0x3f4   : > { %s887_s16 = smov %s695_s17  ;;  %s888_s17 = smov %s765_s24 }
 0x3f5   : > { %s889_s18 = smov %s754_s21  ;;  %16 = sbr.rel (!%p14_p3) target bundleno = 3 (0x3), region = 71 }
 0x3fc   :  { %487 = vsyncpa [#allocation3], 1 }
 0x3fd   :  { %489 = vsyncpa [#allocation3 + $0x1], 1 }

</bundles_post_ra>
